<compile_context>
chip_gen: v5e
topology: v5e:2x2
jax: 0.10.0
libtpu: 0.0.40
codegen_flags: <defaults>
</compile_context>

<pallas_src>
import jax
import jax.numpy as jnp
from jax import lax
from jax.experimental import pallas as pl
from jax.experimental.pallas import tpu as pltpu


# ----------------------------------------------------------------------------
# Kernels
# ----------------------------------------------------------------------------
def _s_hat_kernel(uidx_ref, iidx_ref, p_ref, qt_ref, bu_ref, bi_ref, s_ref):
    """One (TU, TI) tile of S_hat * interaction_mask."""
    TU, K = p_ref.shape
    TI = qt_ref.shape[1]
    B = uidx_ref.shape[1]

    u0 = pl.program_id(0) * TU            # global row offset of this tile
    i0 = pl.program_id(1) * TI            # global col offset of this tile

    uidx = uidx_ref[...]                  # (1, B) int32
    iidx = iidx_ref[...]                  # (B, 1) int32

    # One-hot "scatter" built directly in MXU-native layouts.
    # u_oh: (TU, B)  (LHS, M x Kc) ; i_oh: (B, TI)  (RHS, Kc x N, lane-dense).
    u_hit = (lax.broadcasted_iota(jnp.int32, (TU, B), 0) + u0) == uidx
    i_hit = (lax.broadcasted_iota(jnp.int32, (B, TI), 1) + i0) == iidx

    # 0/1 values and counts <= B are exact in bf16; accumulate in f32.
    inter_cnt = jnp.dot(u_hit.astype(jnp.bfloat16),
                        i_hit.astype(jnp.bfloat16),
                        preferred_element_type=jnp.float32)      # (TU, TI)

    # Main matmul: MXU-native (TU,K) @ (K,TI); add broadcast biases.
    s_hat = jnp.dot(p_ref[...], qt_ref[...],
                    preferred_element_type=jnp.float32)
    s_hat = s_hat + bu_ref[...] + bi_ref[...]                    # (TU, TI)

    # Select instead of materializing a float mask + multiply.
    s_ref[...] = jnp.where(inter_cnt > 0.5, s_hat, 0.0)


def _user_mask_kernel(uidx_ref, p_ref, bu_ref, p_out_ref, bu_out_ref):
    """Masked P and bu for one tile of users."""
    TU = p_ref.shape[0]
    B = uidx_ref.shape[1]
    u0 = pl.program_id(0) * TU

    hit = (lax.broadcasted_iota(jnp.int32, (TU, B), 0) + u0) == uidx_ref[...]
    keep = jnp.max(hit.astype(jnp.float32), axis=1, keepdims=True) > 0.5  # (TU,1)

    p_out_ref[...] = jnp.where(keep, p_ref[...], 0.0)
    bu_out_ref[...] = jnp.where(keep, bu_ref[...], 0.0)


def _item_mask_kernel(iidx_row_ref, iidx_col_ref, q_ref, bi_ref,
                      q_out_ref, bi_out_ref):
    """Masked Q and bi (row layout) for one tile of items."""
    TI = q_ref.shape[0]
    B = iidx_row_ref.shape[1]
    i0 = pl.program_id(0) * TI

    # (TI, B) one-hot -> (TI, 1) mask for Q; (B, TI) one-hot -> (1, TI) mask
    # for the lane-dense bi row (no transposes).
    hit_col = (lax.broadcasted_iota(jnp.int32, (TI, B), 0) + i0) == iidx_row_ref[...]
    hit_row = (lax.broadcasted_iota(jnp.int32, (B, TI), 1) + i0) == iidx_col_ref[...]

    keep_col = jnp.max(hit_col.astype(jnp.float32), axis=1, keepdims=True) > 0.5
    keep_row = jnp.max(hit_row.astype(jnp.float32), axis=0, keepdims=True) > 0.5

    q_out_ref[...] = jnp.where(keep_col, q_ref[...], 0.0)
    bi_out_ref[...] = jnp.where(keep_row, bi_ref[...], 0.0)


# ----------------------------------------------------------------------------
# Wrapper
# ----------------------------------------------------------------------------
def _pick_tile(dim, preferred, align):
    """Largest tile <= preferred that divides `dim` and is `align`-aligned;
    falls back to the full dim (block == full array dim is always legal)."""
    if dim <= preferred:
        return dim
    t = (preferred // align) * align
    while t >= align:
        if dim % t == 0:
            return t
        t -= align
    return dim


def masked_matrix_factorization(users_idx, items_idx, P, Q, bu, bi,
                                *, tile_u=256, tile_i=512):
    """Returns (S_hat*W, P*Wp, bu*Wbu, Q*Wq, bi*Wbi) — same semantics as the
    PyTorch module's forward."""
    U, K = P.shape
    I = Q.shape[0]
    B = users_idx.shape[0]
    assert U < 2**31 and I < 2**31, "int32 index range exceeded"

    uidx_row = users_idx.astype(jnp.int32).reshape(1, B)
    iidx_row = items_idx.astype(jnp.int32).reshape(1, B)
    iidx_col = items_idx.astype(jnp.int32).reshape(B, 1)

    P = P.astype(jnp.float32)
    Q = Q.astype(jnp.float32)
    Qt = Q.T                                   # (K, I) MXU-native RHS
    bu = bu.astype(jnp.float32).reshape(U, 1)
    bi_row = bi.astype(jnp.float32).reshape(1, I)

    TU = _pick_tile(U, tile_u, 8)              # sublane-aligned (or full U)
    TI = _pick_tile(I, tile_i, 128)            # lane-aligned (or full I)

    # ---- heavy kernel: masked S_hat, tiled over (U, I) -----------------
    s = pl.pallas_call(
        _s_hat_kernel,
        out_shape=jax.ShapeDtypeStruct((U, I), jnp.float32),
        grid=(U // TU, I // TI),
        in_specs=[
            pl.BlockSpec((1, B), lambda i, j: (0, 0)),    # uidx (replicated)
            pl.BlockSpec((B, 1), lambda i, j: (0, 0)),    # iidx (replicated)
            pl.BlockSpec((TU, K), lambda i, j: (i, 0)),   # P tile
            pl.BlockSpec((K, TI), lambda i, j: (0, j)),   # Q^T tile
            pl.BlockSpec((TU, 1), lambda i, j: (i, 0)),   # bu tile
            pl.BlockSpec((1, TI), lambda i, j: (0, j)),   # bi tile
        ],
        out_specs=pl.BlockSpec((TU, TI), lambda i, j: (i, j)),
        compiler_params=pltpu.CompilerParams(
            dimension_semantics=("parallel", "parallel"),
            vmem_limit_bytes=32 * 1024 * 1024),
        cost_estimate=pl.CostEstimate(
            flops=2 * U * I * (K + B),
            transcendentals=0,
            bytes_accessed=4 * (U * I + U * K + I * K + U + I)),
    )(uidx_row, iidx_col, P, Qt, bu, bi_row)

    # ---- small kernel: masked P / bu, tiled over U ---------------------
    p_m, bu_m = pl.pallas_call(
        _user_mask_kernel,
        out_shape=(jax.ShapeDtypeStruct((U, K), jnp.float32),
                   jax.ShapeDtypeStruct((U, 1), jnp.float32)),
        grid=(U // TU,),
        in_specs=[pl.BlockSpec((1, B), lambda i: (0, 0)),
                  pl.BlockSpec((TU, K), lambda i: (i, 0)),
                  pl.BlockSpec((TU, 1), lambda i: (i, 0))],
        out_specs=(pl.BlockSpec((TU, K), lambda i: (i, 0)),
                   pl.BlockSpec((TU, 1), lambda i: (i, 0))),
        compiler_params=pltpu.CompilerParams(
            dimension_semantics=("parallel",)),
    )(uidx_row, P, bu)

    # ---- small kernel: masked Q / bi, tiled over I ---------------------
    q_m, bi_m = pl.pallas_call(
        _item_mask_kernel,
        out_shape=(jax.ShapeDtypeStruct((I, K), jnp.float32),
                   jax.ShapeDtypeStruct((1, I), jnp.float32)),
        grid=(I // TI,),
        in_specs=[pl.BlockSpec((1, B), lambda i: (0, 0)),
                  pl.BlockSpec((B, 1), lambda i: (0, 0)),
                  pl.BlockSpec((TI, K), lambda i: (i, 0)),
                  pl.BlockSpec((1, TI), lambda i: (0, i))],
        out_specs=(pl.BlockSpec((TI, K), lambda i: (i, 0)),
                   pl.BlockSpec((1, TI), lambda i: (0, i))),
        compiler_params=pltpu.CompilerParams(
            dimension_semantics=("parallel",)),
    )(iidx_row, iidx_col, Q, bi_row)

    return s, p_m, bu_m, q_m, bi_m.reshape(I)


# ----------------------------------------------------------------------------
# Reference + test
# ----------------------------------------------------------------------------
def _reference(users_idx, items_idx, P, Q, bu, bi):
    U, K = P.shape
    I = Q.shape[0]
    interaction_w = jnp.zeros((U, I), jnp.float32).at[users_idx, items_idx].set(1.0)
    uw = jnp.zeros((U, K), jnp.float32).at[users_idx].set(1.0)
    iw = jnp.zeros((I, K), jnp.float32).at[items_idx].set(1.0)
    buw = jnp.zeros((U, 1), jnp.float32).at[users_idx].set(1.0)
    biw = jnp.zeros((I,), jnp.float32).at[items_idx].set(1.0)
    s_hat = P @ Q.T + bu + bi
    return (s_hat * interaction_w, P * uw, bu * buw, Q * iw, bi * biw)


if __name__ == "__main__":
    num_users, num_items, num_factors, batch = 128, 256, 16, 8

    key = jax.random.PRNGKey(0)
    k_p, k_q, k_bu, k_bi, k_u, k_i = jax.random.split(key, 6)

    # torch.randn init for factor matrices; module uses zero biases but we use
    # small randoms so the bias broadcast in S_hat is numerically exercised.
    P = jax.random.normal(k_p, (num_users, num_factors), jnp.float32)
    Q = jax.random.normal(k_q, (num_items, num_factors), jnp.float32)
    bu = 0.1 * jax.random.normal(k_bu, (num_users, 1), jnp.float32)
    bi = 0.1 * jax.random.normal(k_bi, (num_items,), jnp.float32)

    users_idx = jax.random.randint(k_u, (batch,), 0, num_users, jnp.int32)
    items_idx = jax.random.randint(k_i, (batch,), 0, num_items, jnp.int32)

    # Tiles chosen smaller than the (small) demo dims so the grid/tiling path
    # (replicated index blocks, per-tile offsets) is actually exercised.
    outs = masked_matrix_factorization(users_idx, items_idx, P, Q, bu, bi,
                                       tile_u=64, tile_i=128)
    outs = jax.block_until_ready(outs)

    refs = _reference(users_idx, items_idx, P, Q, bu, bi)
    for o, r in zip(outs, refs):
        assert o.shape == r.shape and o.dtype == r.dtype
        assert jnp.allclose(o, r, atol=1e-5, rtol=1e-5)

    print("KERNEL_OK")
</pallas_src>

<mosaic_0001>
module attributes {stable_mosaic.version = 11 : i64} {
  func.func @_s_hat_kernel(%arg0: i32, %arg1: i32, %arg2: memref<1x8xi32, #tpu.memory_space<vmem>>, %arg3: memref<8x1xi32, #tpu.memory_space<vmem>>, %arg4: memref<64x16xf32, #tpu.memory_space<vmem>>, %arg5: memref<16x128xf32, #tpu.memory_space<vmem>>, %arg6: memref<64x1xf32, #tpu.memory_space<vmem>>, %arg7: memref<1x128xf32, #tpu.memory_space<vmem>>, %arg8: memref<64x128xf32, #tpu.memory_space<vmem>>) attributes {dimension_semantics = [#tpu.dimension_semantics<parallel>, #tpu.dimension_semantics<parallel>], iteration_bounds = array<i64: 2, 2>, scalar_prefetch = 0 : i64, scratch_operands = 0 : i64, tpu.core_type = #tpu.core_type<tc>, window_params = [{pipeline_mode = #tpu.pipeline_mode<synchronous>, transform_indices = @transform_0, window_bounds = array<i64: 1, 8>}, {pipeline_mode = #tpu.pipeline_mode<synchronous>, transform_indices = @transform_1, window_bounds = array<i64: 8, 1>}, {transform_indices = @transform_2, window_bounds = array<i64: 64, 16>}, {transform_indices = @transform_3, window_bounds = array<i64: 16, 128>}, {transform_indices = @transform_4, window_bounds = array<i64: 64, 1>}, {transform_indices = @transform_5, window_bounds = array<i64: 1, 128>}, {transform_indices = @transform_6, window_bounds = array<i64: 64, 128>}]} {
    %c64_i32 = arith.constant 64 : i32
    %0 = arith.muli %arg0, %c64_i32 : i32
    %c128_i32 = arith.constant 128 : i32
    %1 = arith.muli %arg1, %c128_i32 : i32
    %c0 = arith.constant 0 : index
    %c0_0 = arith.constant 0 : index
    %2 = vector.load %arg2[%c0, %c0_0] : memref<1x8xi32, #tpu.memory_space<vmem>>, vector<1x8xi32>
    %c0_1 = arith.constant 0 : index
    %c0_2 = arith.constant 0 : index
    %3 = vector.load %arg3[%c0_1, %c0_2] : memref<8x1xi32, #tpu.memory_space<vmem>>, vector<8x1xi32>
    %4 = tpu.iota {dimensions = array<i32: 0>} : vector<64x8xi32>
    %5 = vector.broadcast %0 : i32 to vector<64x8xi32>
    %6 = arith.addi %4, %5 : vector<64x8xi32>
    %7 = vector.broadcast %2 : vector<1x8xi32> to vector<64x8xi32>
    %8 = arith.cmpi eq, %6, %7 : vector<64x8xi32>
    %9 = tpu.iota {dimensions = array<i32: 1>} : vector<8x128xi32>
    %10 = vector.broadcast %1 : i32 to vector<8x128xi32>
    %11 = arith.addi %9, %10 : vector<8x128xi32>
    %12 = vector.broadcast %3 : vector<8x1xi32> to vector<8x128xi32>
    %13 = arith.cmpi eq, %11, %12 : vector<8x128xi32>
    %14 = arith.extui %8 : vector<64x8xi1> to vector<64x8xi32>
    %15 = arith.sitofp %14 : vector<64x8xi32> to vector<64x8xf32>
    %16 = arith.truncf %15 : vector<64x8xf32> to vector<64x8xbf16>
    %17 = arith.extui %13 : vector<8x128xi1> to vector<8x128xi32>
    %18 = arith.sitofp %17 : vector<8x128xi32> to vector<8x128xf32>
    %19 = arith.truncf %18 : vector<8x128xf32> to vector<8x128xbf16>
    %cst = arith.constant dense<0.000000e+00> : vector<64x128xf32>
    %20 = tpu.matmul %16, %19, %cst {dimension_numbers = #tpu.dot_dimension_numbers<[1], [0], [0], [1], [0, 0, 1, 1], [], []>} : vector<64x8xbf16>, vector<8x128xbf16>, vector<64x128xf32> -> vector<64x128xf32>
    %c0_3 = arith.constant 0 : index
    %c0_4 = arith.constant 0 : index
    %21 = vector.load %arg4[%c0_3, %c0_4] : memref<64x16xf32, #tpu.memory_space<vmem>>, vector<64x16xf32>
    %c0_5 = arith.constant 0 : index
    %c0_6 = arith.constant 0 : index
    %22 = vector.load %arg5[%c0_5, %c0_6] : memref<16x128xf32, #tpu.memory_space<vmem>>, vector<16x128xf32>
    %cst_7 = arith.constant dense<0.000000e+00> : vector<64x128xf32>
    %23 = tpu.matmul %21, %22, %cst_7 {dimension_numbers = #tpu.dot_dimension_numbers<[1], [0], [0], [1], [0, 0, 1, 1], [], []>} : vector<64x16xf32>, vector<16x128xf32>, vector<64x128xf32> -> vector<64x128xf32>
    %c0_8 = arith.constant 0 : index
    %c0_9 = arith.constant 0 : index
    %24 = vector.load %arg6[%c0_8, %c0_9] : memref<64x1xf32, #tpu.memory_space<vmem>>, vector<64x1xf32>
    %25 = vector.broadcast %24 : vector<64x1xf32> to vector<64x128xf32>
    %26 = arith.addf %23, %25 : vector<64x128xf32>
    %c0_10 = arith.constant 0 : index
    %c0_11 = arith.constant 0 : index
    %27 = vector.load %arg7[%c0_10, %c0_11] : memref<1x128xf32, #tpu.memory_space<vmem>>, vector<1x128xf32>
    %28 = vector.broadcast %27 : vector<1x128xf32> to vector<64x128xf32>
    %29 = arith.addf %26, %28 : vector<64x128xf32>
    %cst_12 = arith.constant 5.000000e-01 : f32
    %30 = vector.broadcast %cst_12 : f32 to vector<64x128xf32>
    %31 = arith.cmpf ogt, %20, %30 : vector<64x128xf32>
    %cst_13 = arith.constant 0.000000e+00 : f32
    %32 = vector.broadcast %cst_13 : f32 to vector<64x128xf32>
    %33 = arith.select %31, %29, %32 : vector<64x128xi1>, vector<64x128xf32>
    %c0_14 = arith.constant 0 : index
    %c0_15 = arith.constant 0 : index
    %34 = vector.load %arg8[%c0_14, %c0_15] : memref<64x128xf32, #tpu.memory_space<vmem>>, vector<64x128xf32>
    tpu.vector_store %arg8[%c0_14, %c0_15], %33 {strides = array<i32>} : memref<64x128xf32, #tpu.memory_space<vmem>>, vector<64x128xf32>,
    return
  }
  func.func @transform_0(%arg0: i32, %arg1: i32) -> (i32, i32) {
    %c0_i32 = arith.constant 0 : i32
    %c0_i32_0 = arith.constant 0 : i32
    %c0_i32_1 = arith.constant 0 : i32
    return %c0_i32, %c0_i32_0 : i32, i32
  }
  func.func @transform_1(%arg0: i32, %arg1: i32) -> (i32, i32) {
    %c0_i32 = arith.constant 0 : i32
    %c0_i32_0 = arith.constant 0 : i32
    %c0_i32_1 = arith.constant 0 : i32
    return %c0_i32, %c0_i32_0 : i32, i32
  }
  func.func @transform_2(%arg0: i32, %arg1: i32) -> (i32, i32) {
    %c0_i32 = arith.constant 0 : i32
    %c0_i32_0 = arith.constant 0 : i32
    return %arg0, %c0_i32 : i32, i32
  }
  func.func @transform_3(%arg0: i32, %arg1: i32) -> (i32, i32) {
    %c0_i32 = arith.constant 0 : i32
    %c0_i32_0 = arith.constant 0 : i32
    return %c0_i32, %arg1 : i32, i32
  }
  func.func @transform_4(%arg0: i32, %arg1: i32) -> (i32, i32) {
    %c0_i32 = arith.constant 0 : i32
    %c0_i32_0 = arith.constant 0 : i32
    return %arg0, %c0_i32 : i32, i32
  }
  func.func @transform_5(%arg0: i32, %arg1: i32) -> (i32, i32) {
    %c0_i32 = arith.constant 0 : i32
    %c0_i32_0 = arith.constant 0 : i32
    return %c0_i32, %arg1 : i32, i32
  }
  func.func @transform_6(%arg0: i32, %arg1: i32) -> (i32, i32) {
    %c0_i32 = arith.constant 0 : i32
    return %arg0, %arg1 : i32, i32
  }
}

</mosaic_0001>

<bundles_post_ra>
// kernel: tpu_custom_call.1
= control target key start
LH: loop header
LB: loop body
LE: loop exit
PB: predicated region body
PF: predicated region fallthrough
CT: control target
= control target key end

     0   :  { %s1284_s0 = inlined_call_operand.vmem [shape: s32[1,8], index: 0, kind: input, shape index: {}]   ;;  %s1285_s1 = inlined_call_operand.vmem [shape: s32[8,1], index: 1, kind: input, shape index: {}]   ;;  %s1286_s2 = inlined_call_operand.vmem [shape: f32[128,16], index: 2, kind: input, shape index: {}]   ;;  %s1287_s3 = inlined_call_operand.vmem [shape: f32[16,256], index: 3, kind: input, shape index: {}]   ;;  %s1288_s4 = inlined_call_operand.vmem [shape: f32[128,1], index: 4, kind: input, shape index: {}]   ;;  %s1289_s5 = inlined_call_operand.vmem [shape: f32[1,256], index: 5, kind: input, shape index: {}]   ;;  %s1290_s6 = inlined_call_operand.hbm [shape: f32[128,256], index: 6, kind: output, shape index: {}]  }
   0x1   :  { %1292 = sst [smem:[#allocation7_spill]] %s1284_s0 }
   0x2   :  { %11 = vsyncpa [#allocation4], 0 }
   0x3   :  { %13 = vsyncpa [#allocation4 + $0x1], 0  ;;  %s1058_s21 = smov 0   ;;  %s1060_s22 = smov 0  }
   0x4   :  { %s1062_s23 = smov 0   ;;  %s1064_s24 = smov 0  }
   0x5   :  { %s1066_s25 = smov 0   ;;  %s1068_s26 = smov 0  }
   0x6   :  { %s1070_s27 = smov 0   ;;  %s1072_s28 = smov 0  }
   0x7   :  { %s1074_s29 = smov 0   ;;  %s1076_s30 = smov 0  }
   0x8 LB: > { %s763_s7 = sadd.s32 4294967295, %s1016_s30   ;;  %s764_s8 = sadd.s32 4294967294, %s1016_s30   ;;  %s1016_s30 = sphi %s1076_s30, %s19_s30   ;;  %s1012_s29 = sphi %s1074_s29, %s1307_s29   ;;  %s1008_s28 = sphi %s1072_s28, %s1306_s28   ;;  %s1004_s27 = sphi %s1070_s27, %s1305_s27   ;;  %s1000_s26 = sphi %s1068_s26, %s1304_s26   ;;  %s996_s25 = sphi %s1066_s25, %s1303_s25   ;;  %s992_s24 = sphi %s1064_s24, %s1302_s24   ;;  %s988_s23 = sphi %s1062_s23, %s1301_s23   ;;  %s984_s22 = sphi %s1060_s22, %s1300_s22   ;;  %s980_s21 = sphi %s1058_s21, %s1299_s21  }
   0x9   : > { %s28_s9 = sadd.s32 1, %s1008_s28  ;;  %s31_s10 = sadd.s32 1, %s1012_s29 }
   0xa   : > { %p29_p0 = scmp.ge.s32.totalorder %s28_s9, 2  ;;  %s106_s11 = sadd.s32 1, %s996_s25 }
   0xb   : > { %p113_p1 = scmp.ne.s32.totalorder %s996_s25, %s992_s24  ;;  %p114_p2 = scmp.eq.s32.totalorder %s1016_s30, 0 }
   0xc   : > { %s1309_s9 = smov (%p29_p0, %s28_s9), 0  ;;  %s1311_s10 = smov (!%p29_p0, %s31_s10), %s1012_s29 }
   0xd   : > { %s103_s12 = ssub.s32 %s1008_s28, %s1309_s9  ;;  %p1121_p3 = por %p114_p2, %p113_p1 }
   0xe   : > { %p33_p4 = scmp.ge.s32.totalorder %s1311_s10, 2  ;;  %p104_p5 = scmp.eq.s32.totalorder %s103_s12, 0 }
   0xf   : > { %s186_s14 = sadd.s32 1, %s988_s23  ;;  %p196_p6 = scmp.ne.s32.totalorder %s988_s23, %s984_s22 }
  0x10   : > { %s1313_s10 = smov (%p33_p4, %s1311_s10), 0  ;;  %p197_p7 = scmp.eq.s32.totalorder %s763_s7, 3 }
  0x11   : > { %1294 = sst [smem:[#allocation6_spill]] %s1313_s10  ;;  %s181_s16 = ssub.s32 %s1012_s29, %s1313_s10 }
  0x12   : > { %s1131_s15 = scalar_select %p104_p5, %s996_s25, %s106_s11  }
  0x13   : > { %s183_s17 = sor.u32 %s181_s16, %s103_s12  ;;  %p202_p8 = scmp.ne.s32.totalorder %s984_s22, %s980_s21 }
  0x14   : > { %p184_p9 = scmp.eq.s32.totalorder %s183_s17, 0  ;;  %p1137_p10 = por %p197_p7, %p196_p6 }
  0x15   : > { %p203_p11 = scmp.eq.s32.totalorder %s764_s8, 3  ;;  %p766_p13 = scmp.ge.s32.totalorder %s1016_s30, 4 }
  0x16   : > { %s1142_s19 = scalar_select %p184_p9, %s988_s23, %s186_s14  }
  0x17   : > { %p1144_p12 = por %p203_p11, %p202_p8  ;;  %225 = sbr.rel (%p766_p13) target bundleno = 34 (0x22), region = 24 }
  0x1c   : > { %237 = sbr.rel (!%p1121_p3) target bundleno = 34 (0x22), region = 32  ;;  %s239_s7 = sand.u32 (%p1121_p3), 1, %s996_s25  }
  0x1d   : > { %s768_s11 = sshll.u32 (%p1121_p3), %s1008_s28, 3  ;;  %s767_s12 = sshll.u32 (%p1121_p3), %s239_s7, 4 }
  0x1e   : > { %s243_s8 = scalar_lea.vmem (%p1121_p3), %s1287_s3, %s768_s11  ;;  %s241_s14 = scalar_lea.vmem (%p1121_p3), [#allocation2], %s767_s12 }
  0x1f   : > { %v274_v0 = vld [vmem:[%s243_s8] sm:$0xff] (%p1121_p3)  ;;  %v276_v1 = vld [vmem:[%s243_s8 + $0x10] sm:$0xff] (%p1121_p3) }
  0x20   : > { %275 = vst [vmem:[%s241_s14] sm:$0xff] (%p1121_p3), %v274_v0 }
  0x21   : > { %277 = vst [vmem:[%s241_s14 + $0x8] sm:$0xff] %v276_v1 }
  0x22 PF: > { %p769_p0 = scmp.ge.s32.totalorder %s1016_s30, 1  ;;  %p297_p1 = scmp.lt.s32.totalorder %s1016_s30, 5 }
  0x24   : > { %p298_p2 = pnand %p769_p0, %p297_p1 }
  0x25   : > { %s304_s7 = sand.u32 (!%p298_p2), 1, %s992_s24   ;;  %s772_s11 = sshll.u32 (!%p298_p2), %s1004_s27, 3 }
  0x26   : > { %301 = sbr.rel (%p298_p2) target bundleno = 331 (0x14b), region = 78  ;;  %s770_s12 = sshll.u32 (!%p298_p2), %s304_s7, 4 }
  0x27   : > { %p347_p3 = scmp.lt.s32.totalorder (!%p298_p2), %s772_s11, 15  ;;  %s306_s16 = scalar_lea.vmem (!%p298_p2), [#allocation2], %s770_s12 }
  0x28   : > { %p358_p4 = scmp.lt.s32.totalorder (!%p298_p2), %s1000_s26, 1  ;;  %s777_s17 = sshll.u32 (!%p298_p2), %s1000_s26, 7 }
  0x29   : > { %s1297_s0 = sld [smem:[#allocation7_spill]] (!%p298_p2) }
  0x2b   : > { %v366_v2 = vld [vmem:[%s1285_s1] sm:$0xff]  ;;  %v1018_v3 = vmov 0   ;;  %v480_v4 = vld [vmem:[%s306_s16 + $0x8] sm:$0xff]  ;;  %s1315_s11 = smov (!%p347_p3, %s772_s11), 15  ;;  %vm529_vm0 = vcmask 130048   ;;  %v367_v16 = vlaneseq  ;;  %v396_v25 = vstv %s777_s17 }
  0x2c   : > { %901 = vset.pattern.permute.xlu0 %v1018_v3  ;;  %902 = vset.pattern.permute.xlu1 %v1018_v3  ;;  %v479_v5 = vld [vmem:[%s306_s16] sm:$0xff]  ;;  %s773_s10 = sshll.u32 %s1315_s11, 3  ;;  %vm438_vm6 = vcmask 1043456   ;;  %v1019_v34 = vmov 0.0   ;;  %vm425_vm7 = vcmask 64512  }
  0x2d   : > { %399 = vperm.xlu0 %901, %v366_v2   ;;  %903 = vset.pattern.permute.xlu2 %v1018_v3  ;;  %s350_s8 = scalar_lea.vmem %s1286_s2, %s773_s10  ;;  %s1170_s7 = scalar_lea.vmem %s1288_s4, %s773_s10  ;;  %v368_v17 = vshrl.u32 %v367_v16, 7  ;;  %v395_v24 = vand.u32 127, %v367_v16 }
  0x2e   : > { %568 = vmatpush.msra.mxu1 %v480_v4  ;;  %807 = vmatpush.msra.mxu3 %v480_v4  ;;  %v471_v6 = vld [vmem:[%s350_s8] sm:$0xff]  ;;  %s1174_s12 = scalar_select %p358_p4, %s1000_s26, 1  ;;  %v476_v9 = vld [vmem:[%s350_s8 + $0x28] sm:$0xff]  ;;  %v477_v12 = vld [vmem:[%s350_s8 + $0x30] sm:$0xff] }
  0x2f   : > { %v475_v7 = vld [vmem:[%s350_s8 + $0x20] sm:$0xff]  ;;  %v486_v10 = vld [vmem:[%s1170_s7 + $0x28] sm:$0xff]  ;;  %v473_v13 = vld [vmem:[%s350_s8 + $0x10] sm:$0xff]  ;;  %s776_s10 = sshll.u32 %s1004_s27, 6  ;;  %v369_v20 = vadd.s32 8, %v368_v17  ;;  %v372_v22 = vadd.s32 32, %v368_v17  ;;  %v397_v32 = vadd.s32 %v396_v25, %v395_v24 }
  0x30   : > { %569 = vmatpush.msra.mxu1 %v479_v5  ;;  %808 = vmatpush.msra.mxu3 %v479_v5  ;;  %v481_v8 = vld [vmem:[%s1170_s7] sm:$0xff]  ;;  %s360_s24 = scalar_lea.vmem %s1289_s5, %s1174_s12  ;;  %v472_v11 = vld [vmem:[%s350_s8 + $0x8] sm:$0xff]  ;;  %v478_v15 = vld [vmem:[%s350_s8 + $0x38] sm:$0xff]  ;;  %v376_v21 = vstv %s776_s10  ;;  %v373_v23 = vadd.s32 40, %v368_v17  ;;  %v370_v45 = vadd.s32 16, %v368_v17  ;;  %v371_v46 = vadd.s32 24, %v368_v17 }
  0x31   : > { %791 = vmatmul.msk.f32.vlgmr.msra.gmra.mxu1 %vm529_vm0, %v471_v6  ;;  %795 = vmatmul.msk.f32.vlgmr.msra.gmra.mxu3 %vm529_vm0, %v475_v7  ;;  %v482_v14 = vld [vmem:[%s1170_s7 + $0x8] sm:$0xff]  ;;  %v474_v18 = vld [vmem:[%s350_s8 + $0x18] sm:$0xff]  ;;  %v483_v19 = vld [vmem:[%s1170_s7 + $0x10] sm:$0xff]  ;;  %v377_v26 = vadd.s32 %v376_v21, %v368_v17  ;;  %v378_v29 = vadd.s32 %v376_v21, %v369_v20  ;;  %v381_v30 = vadd.s32 %v376_v21, %v372_v22  ;;  %v374_v47 = vadd.s32 48, %v368_v17  ;;  %s343_s8 = sand.u32 1, %s984_s22   ;;  %s805_s12 = sshll.u32 %s1004_s27, 4 }
  0x32   : > { %496 = vperm.xlu1 %902, %v482_v14   ;;  %v904_v27 = vld [vmem:[%s1297_s0] ss:$0 sm:$0xff]  ;;  %v487_v28 = vld [vmem:[%s1170_s7 + $0x30] sm:$0xff]  ;;  %v382_v31 = vadd.s32 %v376_v21, %v373_v23  ;;  %v484_v40 = vld [vmem:[%s1170_s7 + $0x18] sm:$0xff]  ;;  %v375_v48 = vadd.s32 56, %v368_v17  ;;  %v379_v50 = vadd.s32 %v376_v21, %v370_v45  ;;  %v380_v51 = vadd.s32 %v376_v21, %v371_v46  ;;  %s771_s16 = sshll.u32 %s343_s8, 6 }
  0x33   : > { %vm386_vm1 = vcmp.eq.s32.totalorder %v377_v26, %v904_v27  ;;  %vm387_vm2 = vcmp.eq.s32.totalorder %v378_v29, %v904_v27  ;;  %vm390_vm3 = vcmp.eq.s32.totalorder %v381_v30, %v904_v27  ;;  %506 = vperm.xlu2 %903, %v484_v40   ;;  %v485_v49 = vld [vmem:[%s1170_s7 + $0x20] sm:$0xff]  ;;  %v383_v52 = vadd.s32 %v376_v21, %v374_v47  ;;  %v488_v54 = vld [vmem:[%s1170_s7 + $0x38] sm:$0xff]  ;;  %s1215_s10 = scalar_lea.vmem [#allocation3], %s771_s16  ;;  %s632_s11 = scalar_lea.sflag [#allocation4], %s343_s8 }
  0x34   : > { %vm391_vm4 = vcmp.eq.s32.totalorder %v382_v31, %v904_v27  ;;  %v778_v35 = vsel %vm386_vm1, 1.0, %v1019_v34  ;;  %v779_v37 = vsel %vm387_vm2, 1.0, %v1019_v34  ;;  %v782_v38 = vsel %vm390_vm3, 1.0, %v1019_v34  ;;  %v1210_v3 = vld [vmem:[%s360_s24] ss:$0 sm:$0xff]  ;;  %s643_s24 = sadd.s32 %s1000_s26, %s805_s12  ;;  %s646_s13 = sshll.u32 %s1215_s10, 4  ;;  %s647_s13 = int_to_ptr.vmem [resolvable:$true] %s646_s13 }
  0x35   : > { %491 = vperm.xlu0 %901, %v481_v8   ;;  %v783_v39 = vsel %vm391_vm4, 1.0, %v1019_v34  ;;  %v418_v43 = vpack.c.bf16 %v779_v37, %v778_v35  ;;  %v384_v53 = vadd.s32 %v376_v21, %v375_v48  ;;  %vm388_vm8 = vcmp.eq.s32.totalorder %v379_v50, %v904_v27  ;;  %s802_s17 = sshll.u32 %s643_s24, 3  ;;  %s926_s27 = scalar_lea.hbm %s1290_s6, 256 }
  0x36   : > { %v420_v44 = vpack.c.bf16 %v783_v39, %v782_v38  ;;  %vm389_vm9 = vcmp.eq.s32.totalorder %v380_v51, %v904_v27  ;;  %vm392_vm10 = vcmp.eq.s32.totalorder %v383_v52, %v904_v27  ;;  %v780_v55 = vsel %vm388_vm8, 1.0, %v1019_v34  ;;  %s645_s26 = scalar_lea.hbm %s1290_s6, %s802_s17 }
  0x37   : > { %vm393_vm11 = vcmp.eq.s32.totalorder %v384_v53, %v904_v27  ;;  %v781_v56 = vsel %vm389_vm9, 1.0, %v1019_v34  ;;  %v784_v57 = vsel %vm392_vm10, 1.0, %v1019_v34  ;;  %s648_s7 = sshll.u32 %s645_s26, 4  ;;  %s649_s7 = int_to_ptr.hbm [resolvable:$true] %s648_s7 }
  0x38   : > { %v785_v58 = vsel %vm393_vm11, 1.0, %v1019_v34  ;;  %v419_v59 = vpack.c.bf16 %v781_v56, %v780_v55  ;;  %s920_s16 = sshra.s32 %s649_s7, 4  ;;  %s921_s16 = int_to_ptr.hbm [resolvable:$true] %s920_s16 }
  0x39   : > { %796 = vmatmul.msk.f32.gmra.mxu3 %vm529_vm0, %v476_v9  ;;  %792 = vmatmul.msk.f32.gmra.mxu1 %vm529_vm0, %v472_v11  ;;  %v421_v60 = vpack.c.bf16 %v785_v58, %v784_v57  ;;  %s922_s12 = scalar_lea.hbm %s921_s16, 64  ;;  %p927_p8 = scmp.lt.s32.totalorder %s921_s16, %s1290_s6 }
  0x3a   : > { %501 = vperm.xlu1 %902, %v483_v19   ;;  %p923_p5 = scmp.ne.s32.totalorder %s921_s16, %s922_s12  ;;  %p928_p9 = scmp.lt.s32.totalorder %s926_s27, %s922_s12 }
  0x3b   : > { %511 = vperm.xlu2 %903, %v485_v49  }
  0x3c   : > { %p924_p6 = pnand %p923_p5, %p1137_p10  ;;  %p929_p11 = por %p928_p9, %p927_p8 }
  0x3d   : > { %516 = vperm.xlu0 %901, %v486_v10  }
  0x3e   : > { %p925_p7 = pneg %p924_p6 }
  0x40   : > { %p930_p13 = pnand %p929_p11, %p925_p7 }
  0x41   : > { %797 = vmatmul.msk.f32.gmra.mxu3 %vm529_vm0, %v477_v12  ;;  %793 = vmatmul.msk.f32.gmra.mxu1 %vm529_vm0, %v473_v13 }
  0x42   : > { %521 = vperm.xlu1 %902, %v487_v28  }
  0x43   : > { %526 = vperm.xlu2 %903, %v488_v54  }
  0x49   : > { %798 = vmatmul.msk.f32.gmra.mxu3 %vm529_vm0, %v478_v15  ;;  %794 = vmatmul.msk.f32.gmra.mxu1 %vm529_vm0, %v474_v18 }
  0x8d   : > { %v507_v61 = vpop.permute.xlu2 %506 }
  0x95   : > { %v512_v5 = vpop.permute.xlu2 %511 }
  0x9f   : > { %v400_v33 = vpop.permute.xlu0 %399 }
  0xa0   : > { %vm401_vm5 = vcmp.eq.s32.totalorder %v397_v32, %v400_v33 }
  0xa1   : > { %v786_v36 = vsel %vm401_vm5, 1.0, %v1019_v34 }
  0xa2   : > { %v424_v41 = vpack.c.bf16 %v786_v36, %v786_v36  ;;  %v527_v36 = vpop.permute.xlu2 %526 }
  0xa4   : > { %v440_v42 = vsel %vm438_vm6, %v424_v41, 0  ;;  %v497_v1 = vpop.permute.xlu1 %496 }
  0xa5   : > { %449 = vmatpush.bf16.msra.mxu0 %v440_v42  ;;  %806 = vmatpush.bf16.msra.mxu2 %v440_v42 }
  0xa7   : > { %v492_v63 = vpop.permute.xlu0 %491 }
  0xa8   : > { %787 = vmatmul.msk.bf16.vlgmr.msra.gmra.mxu0 %vm425_vm7, %v418_v43  ;;  %789 = vmatmul.msk.bf16.vlgmr.msra.gmra.mxu2 %vm425_vm7, %v420_v44 }
  0xac   : > { %v502_v13 = vpop.permute.xlu1 %501 }
  0xae   : > { %v571_v62 = vpop.f32.mrf.mxu1 }
  0xaf   : > { %v572_v2 = vadd.f32 %v571_v62, %v492_v63  ;;  %v517_v19 = vpop.permute.xlu0 %516 }
  0xb1   : > { %v599_v6 = vadd.f32 %v1210_v3, %v572_v2 }
  0xb4   : > { %v583_v0 = vpop.f32.mrf.mxu3  ;;  %v522_v26 = vpop.permute.xlu1 %521 }
  0xb5   : > { %v584_v8 = vadd.f32 %v583_v0, %v512_v5 }
  0xb6   : > { %v574_v4 = vpop.f32.mrf.mxu1 }
  0xb7   : > { %v575_v9 = vadd.f32 %v574_v4, %v497_v1  ;;  %v603_v11 = vadd.f32 %v1210_v3, %v584_v8 }
  0xb8   : > { %788 = vmatmul.msk.bf16.gmra.mxu0 %vm425_vm7, %v419_v59  ;;  %790 = vmatmul.msk.bf16.gmra.mxu2 %vm425_vm7, %v421_v60 }
  0xb9   : > { %v600_v14 = vadd.f32 %v1210_v3, %v575_v9 }
  0xbc   : > { %v586_v12 = vpop.f32.mrf.mxu3 }
  0xbd   : > { %v587_v20 = vadd.f32 %v586_v12, %v517_v19 }
  0xbe   : > { %v577_v16 = vpop.f32.mrf.mxu1 }
  0xbf   : > { %v578_v22 = vadd.f32 %v577_v16, %v502_v13  ;;  %v604_v24 = vadd.f32 %v1210_v3, %v587_v20 }
  0xc1   : > { %v601_v27 = vadd.f32 %v1210_v3, %v578_v22 }
  0xc4   : > { %v589_v23 = vpop.f32.mrf.mxu3 }
  0xc5   : > { %v590_v31 = vadd.f32 %v589_v23, %v522_v26 }
  0xc6   : > { %v580_v30 = vpop.f32.mrf.mxu1 }
  0xc7   : > { %v581_v33 = vadd.f32 %v580_v30, %v507_v61  ;;  %v605_v34 = vadd.f32 %v1210_v3, %v590_v31 }
  0xc9   : > { %v602_v38 = vadd.f32 %v1210_v3, %v581_v33 }
  0xcc   : > { %v592_v37 = vpop.f32.mrf.mxu3 }
  0xcd   : > { %v593_v41 = vadd.f32 %v592_v37, %v527_v36 }
  0xcf   : > { %v606_v43 = vadd.f32 %v1210_v3, %v593_v41 }
 0x125   : > { %v451_v7 = vpop.f32.mrf.mxu0 }
 0x126   : > { %vm607_vm12 = vcmp.gt.f32.partialorder %v451_v7, 0.5 }
 0x127   : > { %v615_v10 = vsel %vm607_vm12, %v599_v6, 0.0 }
 0x128   : > { %623 = vst [vmem:[%s1215_s10] sm:$0xff] %v615_v10 }
 0x12b   : > { %v461_v15 = vpop.f32.mrf.mxu2 }
 0x12c   : > { %vm611_vm13 = vcmp.gt.f32.partialorder %v461_v15, 0.5 }
 0x12d   : > { %v619_v17 = vsel %vm611_vm13, %v603_v11, 0.0  ;;  %v453_v18 = vpop.f32.mrf.mxu0 }
 0x12e   : > { %627 = vst [vmem:[%s1215_s10 + $0x20] sm:$0xff] %v619_v17  ;;  %vm608_vm14 = vcmp.gt.f32.partialorder %v453_v18, 0.5 }
 0x12f   : > { %v616_v21 = vsel %vm608_vm14, %v600_v14, 0.0 }
 0x130   : > { %624 = vst [vmem:[%s1215_s10 + $0x8] sm:$0xff] %v616_v21 }
 0x133   : > { %v463_v25 = vpop.f32.mrf.mxu2 }
 0x134   : > { %vm612_vm15 = vcmp.gt.f32.partialorder %v463_v25, 0.5 }
 0x135   : > { %v620_v28 = vsel %vm612_vm15, %v604_v24, 0.0  ;;  %v456_v29 = vpop.f32.mrf.mxu0 }
 0x136   : > { %628 = vst [vmem:[%s1215_s10 + $0x28] sm:$0xff] %v620_v28  ;;  %vm609_vm0 = vcmp.gt.f32.partialorder %v456_v29, 0.5 }
 0x137   : > { %v617_v32 = vsel %vm609_vm0, %v601_v27, 0.0 }
 0x138   : > { %625 = vst [vmem:[%s1215_s10 + $0x10] sm:$0xff] %v617_v32 }
 0x13b   : > { %v466_v35 = vpop.f32.mrf.mxu2 }
 0x13c   : > { %vm613_vm1 = vcmp.gt.f32.partialorder %v466_v35, 0.5 }
 0x13d   : > { %v621_v39 = vsel %vm613_vm1, %v605_v34, 0.0  ;;  %v458_v40 = vpop.f32.mrf.mxu0 }
 0x13e   : > { %629 = vst [vmem:[%s1215_s10 + $0x30] sm:$0xff] %v621_v39  ;;  %vm610_vm2 = vcmp.gt.f32.partialorder %v458_v40, 0.5 }
 0x13f   : > { %v618_v42 = vsel %vm610_vm2, %v602_v38, 0.0 }
 0x140   : > { %626 = vst [vmem:[%s1215_s10 + $0x18] sm:$0xff] %v618_v42 }
 0x143   : > { %v468_v44 = vpop.f32.mrf.mxu2 }
 0x144   : > { %vm614_vm3 = vcmp.gt.f32.partialorder %v468_v44, 0.5 }
 0x145   : > { %v622_v45 = vsel %vm614_vm3, %v606_v43, 0.0 }
 0x146   : > { %630 = vst [vmem:[%s1215_s10 + $0x38] sm:$0xff] %v622_v45 }
 0x147   : > { %933 = shalt.err (!%p930_p13)
}
 0x148   : > { %s1020_s8 = smov 128   ;;  %s1021_s10 = smov 256  }
 0x149   : > { %s1022_s0 = smov 8  }
 0x14a   : > { %809 = dma.vmem_to_hbm [thread:$0]  (%p1137_p10), %s647_s13, 1024, %s649_s7, %s632_s11, %s1020_s8, %s1021_s10, %s1022_s0  }
 0x14b PF: > { %p815_p0 = scmp.ge.s32.totalorder %s1016_s30, 2  ;;  %s663_s24 = sand.u32 1, %s980_s21  }
 0x14c   : > { %s664_s16 = scalar_lea.sflag [#allocation4], %s663_s24 }
 0x14d   : > { %p812_p1 = pnand %p815_p0, %p1144_p12 }
 0x14f   : > { %p813_p2 = pneg %p812_p1 }
 0x151   : > { %975 = dma.done.wait (%p813_p2), %s664_s16, 1024  }
 0x152   : > { %977 = vsyncadd (%p813_p2), %s664_s16, 4294966272  ;;  %s19_s30 = sadd.s32 1, %s1016_s30   ;;  %s1298_s0 = sld [smem:[#allocation6_spill]] }
 0x153   : > { %p16_p3 = scmp.ge.s32.totalorder %s19_s30, 6   ;;  %s1299_s21 = smov %s984_s22 }
 0x154   : > { %s1300_s22 = smov %s988_s23  ;;  %s1301_s23 = smov %s1142_s19 }
 0x155   : > { %s1302_s24 = smov %s996_s25  ;;  %s1303_s25 = smov %s1131_s15 }
 0x156   : > { %s1304_s26 = smov %s1008_s28  ;;  %s1305_s27 = smov %s1012_s29 }
 0x157   : > { %s1306_s28 = smov %s1309_s9  ;;  %18 = sbr.rel (!%p16_p3) target bundleno = 8 (0x8), region = 131 }
 0x158   : > { %s1307_s29 = smov %s1298_s0 }
 0x15c   :  { %670 = vsyncpa [#allocation4], 1 }
 0x15d   :  { %672 = vsyncpa [#allocation4 + $0x1], 1 }

</bundles_post_ra>
